<compile_context>
chip_gen: v7x
topology: tpu7x:2x2x1
jax: 0.10.0
libtpu: 0.0.40
codegen_flags: <defaults>
</compile_context>

<pallas_src>
import functools

import jax
import jax.numpy as jnp
from jax import lax
from jax.experimental import pallas as pl
from jax.experimental.pallas import tpu as pltpu

LANE = 128  # vreg lane width (last dim)


def _round_up(x, m):
    return (x + m - 1) // m * m


def _wrl_kernel(pred_ref, tgt_ref, out_ref, acc_ref, *,
                alpha, beta, low_rating_boost, high_rating_boost,
                steps, acc_rows, block_elems, n_valid, full_blocks, has_tail):
    i = pl.program_id(1)

    # Wide vector accumulator persists across the reduction axis (grid axis 1).
    @pl.when(i == 0)
    def _():
        acc_ref[...] = jnp.zeros_like(acc_ref)

    p = pred_ref[...].astype(jnp.float32)
    t = tgt_ref[...].astype(jnp.float32)

    base_loss = jnp.abs(p - t)
    diff = t - jnp.float32(0.5)

    b = float(beta)
    if b == int(b) and 0 <= int(b) <= 8:
        n = int(b)
        if n == 0:
            ext = jnp.ones_like(diff)
        else:
            # Even integer beta: |d|^n == d^n, so skip the abs (one VPU op saved).
            base = diff if n % 2 == 0 else jnp.abs(diff)
            ext = base
            for _ in range(n - 1):
                ext = ext * base
    else:
        # Non-integer beta pays for jnp.power (EUP transcendentals).
        ext = jnp.power(jnp.abs(diff), jnp.float32(beta))

    # low/high masks are mutually exclusive (t < 0.3 vs t > 0.9); nested selects
    # reproduce the PyTorch sequential mask assignment exactly.
    factor = jnp.where(
        t < jnp.float32(0.3), jnp.float32(low_rating_boost),
        jnp.where(t > jnp.float32(0.9), jnp.float32(high_rating_boost),
                  jnp.float32(1.0)))

    weighted = base_loss * (jnp.float32(1.0) + jnp.float32(alpha) * ext) * factor
    tm, lane = weighted.shape

    def fold(w):
        # Fold the (tm, 128) tile onto the (acc_rows, 128) accumulator with
        # plain VPU adds (acc_rows independent chains hide VALU latency).
        # The reshape is along full (8,128) tiles -> layout-preserving / free.
        acc_ref[...] += w.reshape(tm // acc_rows, acc_rows, lane).sum(axis=0)

    if has_tail:
        logical = pl.program_id(0) * steps + i

        @pl.when(logical < full_blocks)
        def _():
            fold(weighted)

        @pl.when(logical >= full_blocks)
        def _():
            # Tail blocks only: zero out elements past n_valid.  Covers the
            # ragged tail, the partial last row-block, and fully-duplicate
            # (clamped) blocks -- and is robust to garbage in the undefined
            # padding region of a partial block (select, not multiply).
            rem = n_valid - logical * block_elems
            rid = lax.broadcasted_iota(jnp.int32, (tm, lane), 0)
            lid = lax.broadcasted_iota(jnp.int32, (tm, lane), 1)
            fold(jnp.where(rid * lane + lid < rem, weighted, jnp.float32(0.0)))
    else:
        fold(weighted)

    # Single full reduce to a scalar only on this core's last step.
    @pl.when(i == pl.num_programs(1) - 1)
    def _():
        out_ref[0, 0] = jnp.sum(acc_ref[...])


def weight_rating_loss(predictions, targets, *, alpha=3.0, beta=2.0,
                       low_rating_boost=4.0, high_rating_boost=2.0):
    assert predictions.shape == targets.shape
    n_valid = int(predictions.size)
    assert n_valid > 0

    # Keep the original (possibly narrow) dtype through HBM; the kernel upcasts
    # tile-by-tile in VMEM (memory-bound kernel -> ship the narrow bytes).
    p = predictions.reshape(-1)
    t = targets.reshape(-1)

    # ---- device-aware knobs -------------------------------------------------
    try:
        kind = jax.devices()[0].device_kind.lower()
    except Exception:  # pragma: no cover
        kind = ""
    is_v7 = "v7" in kind
    # v7x: 4 MiB f32 blocks (2 in x 2 buf = 16 MiB, inside 32 MiB scoped default)
    # to amortize the ~0.35us/step overhead against 3.2 TB/s HBM.
    # v5e/v6e: 2 MiB blocks (8 MiB of buffers) -> safely inside v5e's 16 MiB.
    tm_cap = 8192 if is_v7 else 4096
    hw_cores = 2 if is_v7 else 1  # v7x: 2 TensorCores/chip; v5e/v6e: 1

    # dtype-aware sublane multiple (f32 -> 8, bf16/f16 -> 16, int8/fp8 -> 32);
    # take the stricter of the two inputs.
    row_mult = max(max(8, 32 // p.dtype.itemsize), max(8, 32 // t.dtype.itemsize))

    # ---- lane-dense 2-D view; NO full-array pad on the fast path ------------
    if n_valid % LANE:
        # Rare fallback: pad only up to the next lane multiple so the flat
        # array can be viewed as (rows, 128); masked out in-kernel anyway.
        # TODO(synk): avoid this copy with a 1-D BlockSpec if sub-128 tails
        # ever show up on the hot path.
        pad = LANE - n_valid % LANE
        p = jnp.pad(p, (0, pad))
        t = jnp.pad(t, (0, pad))
    rows = p.shape[0] // LANE
    P = p.reshape(rows, LANE)
    T = t.reshape(rows, LANE)

    # ---- tiling --------------------------------------------------------------
    ncores = hw_cores if rows >= hw_cores * 1024 else 1  # no 2-way split for tiny inputs
    tm = min(tm_cap, _round_up(pl.cdiv(rows, ncores), row_mult))
    steps = pl.cdiv(rows, ncores * tm)          # steps per core
    nblk = pl.cdiv(rows, tm)                    # row-blocks that overlap real data
    block_elems = tm * LANE
    full_blocks = n_valid // block_elems        # logical blocks with no invalid lanes
    has_tail = full_blocks < ncores * steps

    # Wide accumulator: largest power-of-two row count (<= 64) dividing tm.
    acc_rows = next(c for c in (64, 32, 16, 8) if tm % c == 0)

    if ncores * steps == nblk:
        imap = lambda c, i: (c * steps + i, 0)
    else:
        # Surplus logical blocks on the last core: clamp to the last real block
        # (keeps the DMA in bounds); the in-kernel mask zeroes their contribution.
        imap = lambda c, i: (jnp.minimum(c * steps + i, nblk - 1), 0)

    kernel = functools.partial(
        _wrl_kernel,
        alpha=alpha, beta=beta,
        low_rating_boost=low_rating_boost, high_rating_boost=high_rating_boost,
        steps=steps, acc_rows=acc_rows, block_elems=block_elems,
        n_valid=n_valid, full_blocks=full_blocks, has_tail=has_tail,
    )

    b = float(beta)
    integer_beta = b == int(b) and 0 <= int(b) <= 8
    cost = pl.CostEstimate(
        flops=13 * n_valid,
        transcendentals=0 if integer_beta else 2 * n_valid,
        bytes_accessed=int(n_valid * (P.dtype.itemsize + T.dtype.itemsize)) + 4 * ncores,
    )

    partials = pl.pallas_call(
        kernel,
        out_shape=jax.ShapeDtypeStruct((ncores, 1), jnp.float32),
        grid_spec=pltpu.PrefetchScalarGridSpec(
            num_scalar_prefetch=0,
            grid=(ncores, steps),
            in_specs=[
                pl.BlockSpec((tm, LANE), imap),
                pl.BlockSpec((tm, LANE), imap),
            ],
            out_specs=pl.BlockSpec((1, 1), lambda c, i: (c, 0),
                                   memory_space=pltpu.SMEM),
            scratch_shapes=[pltpu.VMEM((acc_rows, LANE), jnp.float32)],
        ),
        compiler_params=pltpu.CompilerParams(
            # TODO(synk): if a v7x profile shows one TC running all steps,
            # switch axis 0 to pltpu.CORE_PARALLEL (or drive via pl.core_map).
            dimension_semantics=("parallel", "arbitrary"),
        ),
        cost_estimate=cost,
    )(P, T)

    return jnp.sum(partials) / jnp.float32(n_valid)


def _reference(predictions, targets, alpha=3.0, beta=2.0,
               low_rating_boost=4.0, high_rating_boost=2.0):
    p = predictions.astype(jnp.float32)
    t = targets.astype(jnp.float32)
    base = jnp.abs(p - t)
    ext = jnp.abs(t - 0.5) ** beta
    factor = jnp.where(t < 0.3, low_rating_boost,
                       jnp.where(t > 0.9, high_rating_boost, 1.0))
    return jnp.mean(base * (1.0 + alpha * ext) * factor)


if __name__ == "__main__":
    key = jax.random.PRNGKey(0)
    kp, kt = jax.random.split(key)
    # NCHW-shaped inputs, as the module would see from an upstream conv head.
    predictions = jax.random.uniform(kp, (2, 4, 16, 16), dtype=jnp.float32)
    targets = jax.random.uniform(kt, (2, 4, 16, 16), dtype=jnp.float32)

    loss = jax.block_until_ready(weight_rating_loss(predictions, targets))
    ref = jax.block_until_ready(_reference(predictions, targets))
    assert jnp.allclose(loss, ref, rtol=1e-5, atol=1e-6), (loss, ref)

    print("KERNEL_OK")
</pallas_src>

<mosaic_0001>
module attributes {stable_mosaic.version = 11 : i64} {
  func.func @_wrl_kernel(%arg0: i32, %arg1: i32, %arg2: memref<16x128xf32, #tpu.memory_space<vmem>>, %arg3: memref<16x128xf32, #tpu.memory_space<vmem>>, %arg4: memref<1x1xf32, #tpu.memory_space<smem>>, %arg5: memref<16x128xf32, #tpu.memory_space<vmem>>) attributes {dimension_semantics = [#tpu.dimension_semantics<parallel>, #tpu.dimension_semantics<arbitrary>], iteration_bounds = array<i64: 1, 1>, scalar_prefetch = 0 : i64, scratch_operands = 1 : i64, tpu.core_type = #tpu.core_type<tc>, window_params = [{transform_indices = @transform_0, window_bounds = array<i64: 16, 128>}, {transform_indices = @transform_1, window_bounds = array<i64: 16, 128>}, {transform_indices = @transform_2, window_bounds = array<i64: 1, 1>}]} {
    %c0_i32 = arith.constant 0 : i32
    %0 = arith.cmpi eq, %arg1, %c0_i32 : i32
    %1 = arith.extui %0 : i1 to i32
    %c0_i32_0 = arith.constant 0 : i32
    %2 = arith.cmpi ne, %1, %c0_i32_0 : i32
    scf.if %2 {
      %cst_18 = arith.constant 0.000000e+00 : f32
      %33 = vector.broadcast %cst_18 : f32 to vector<16x128xf32>
      %c0_19 = arith.constant 0 : index
      %c0_20 = arith.constant 0 : index
      %34 = vector.load %arg5[%c0_19, %c0_20] : memref<16x128xf32, #tpu.memory_space<vmem>>, vector<16x128xf32>
      tpu.vector_store %arg5[%c0_19, %c0_20], %33 {strides = array<i32>} : memref<16x128xf32, #tpu.memory_space<vmem>>, vector<16x128xf32>,
    } else {
    }
    %c0 = arith.constant 0 : index
    %c0_1 = arith.constant 0 : index
    %3 = vector.load %arg2[%c0, %c0_1] : memref<16x128xf32, #tpu.memory_space<vmem>>, vector<16x128xf32>
    %c0_2 = arith.constant 0 : index
    %c0_3 = arith.constant 0 : index
    %4 = vector.load %arg3[%c0_2, %c0_3] : memref<16x128xf32, #tpu.memory_space<vmem>>, vector<16x128xf32>
    %5 = arith.subf %3, %4 : vector<16x128xf32>
    %6 = math.absf %5 : vector<16x128xf32>
    %cst = arith.constant 5.000000e-01 : f32
    %7 = vector.broadcast %cst : f32 to vector<16x128xf32>
    %8 = arith.subf %4, %7 : vector<16x128xf32>
    %9 = arith.mulf %8, %8 : vector<16x128xf32>
    %cst_4 = arith.constant 3.000000e-01 : f32
    %10 = vector.broadcast %cst_4 : f32 to vector<16x128xf32>
    %11 = arith.cmpf olt, %4, %10 : vector<16x128xf32>
    %cst_5 = arith.constant 0.899999976 : f32
    %12 = vector.broadcast %cst_5 : f32 to vector<16x128xf32>
    %13 = arith.cmpf ogt, %4, %12 : vector<16x128xf32>
    %cst_6 = arith.constant 2.000000e+00 : f32
    %cst_7 = arith.constant 1.000000e+00 : f32
    %14 = vector.broadcast %cst_6 : f32 to vector<16x128xf32>
    %15 = vector.broadcast %cst_7 : f32 to vector<16x128xf32>
    %16 = arith.select %13, %14, %15 : vector<16x128xi1>, vector<16x128xf32>
    %cst_8 = arith.constant 4.000000e+00 : f32
    %17 = vector.broadcast %cst_8 : f32 to vector<16x128xf32>
    %18 = arith.select %11, %17, %16 : vector<16x128xi1>, vector<16x128xf32>
    %cst_9 = arith.constant 3.000000e+00 : f32
    %19 = vector.broadcast %cst_9 : f32 to vector<16x128xf32>
    %20 = arith.mulf %19, %9 : vector<16x128xf32>
    %cst_10 = arith.constant 1.000000e+00 : f32
    %21 = vector.broadcast %cst_10 : f32 to vector<16x128xf32>
    %22 = arith.addf %21, %20 : vector<16x128xf32>
    %23 = arith.mulf %6, %22 : vector<16x128xf32>
    %24 = arith.mulf %23, %18 : vector<16x128xf32>
    %c0_11 = arith.constant 0 : index
    %c0_12 = arith.constant 0 : index
    %25 = vector.load %arg5[%c0_11, %c0_12] : memref<16x128xf32, #tpu.memory_space<vmem>>, vector<16x128xf32>
    %26 = vector.shape_cast %24 : vector<16x128xf32> to vector<1x16x128xf32>
    %cst_13 = arith.constant dense<0.000000e+00> : vector<16x128xf32>
    %27 = vector.multi_reduction <add>, %26, %cst_13 [0] : vector<1x16x128xf32> to vector<16x128xf32>
    %28 = arith.addf %25, %27 : vector<16x128xf32>
    %c0_14 = arith.constant 0 : index
    %c0_15 = arith.constant 0 : index
    %29 = vector.load %arg5[%c0_14, %c0_15] : memref<16x128xf32, #tpu.memory_space<vmem>>, vector<16x128xf32>
    tpu.vector_store %arg5[%c0_14, %c0_15], %28 {strides = array<i32>} : memref<16x128xf32, #tpu.memory_space<vmem>>, vector<16x128xf32>,
    %c0_i32_16 = arith.constant 0 : i32
    %30 = arith.cmpi eq, %arg1, %c0_i32_16 : i32
    %31 = arith.extui %30 : i1 to i32
    %c0_i32_17 = arith.constant 0 : i32
    %32 = arith.cmpi ne, %31, %c0_i32_17 : i32
    scf.if %32 {
      %c0_18 = arith.constant 0 : index
      %c0_19 = arith.constant 0 : index
      %33 = vector.load %arg5[%c0_18, %c0_19] : memref<16x128xf32, #tpu.memory_space<vmem>>, vector<16x128xf32>
      %34 = vector.shape_cast %33 : vector<16x128xf32> to vector<1x16x128xf32>
      %cst_20 = arith.constant dense<0.000000e+00> : vector<1xf32>
      %35 = vector.multi_reduction <add>, %34, %cst_20 [1, 2] : vector<1x16x128xf32> to vector<1xf32>
      %36 = vector.shape_cast %35 : vector<1xf32> to vector<1x1x1xf32>
      %37 = vector.extract %36[0, 0, 0] : f32 from vector<1x1x1xf32>
      %c0_21 = arith.constant 0 : index
      %c0_22 = arith.constant 0 : index
      %38 = memref.load %arg4[%c0_21, %c0_22] : memref<1x1xf32, #tpu.memory_space<smem>>
      memref.store %37, %arg4[%c0_21, %c0_22] : memref<1x1xf32, #tpu.memory_space<smem>>
    } else {
    }
    return
  }
  func.func @transform_0(%arg0: i32, %arg1: i32) -> (i32, i32) {
    %c1_i32 = arith.constant 1 : i32
    %0 = arith.muli %arg0, %c1_i32 : i32
    %1 = arith.addi %0, %arg1 : i32
    %c0_i32 = arith.constant 0 : i32
    %c0_i32_0 = arith.constant 0 : i32
    return %1, %c0_i32 : i32, i32
  }
  func.func @transform_1(%arg0: i32, %arg1: i32) -> (i32, i32) {
    %c1_i32 = arith.constant 1 : i32
    %0 = arith.muli %arg0, %c1_i32 : i32
    %1 = arith.addi %0, %arg1 : i32
    %c0_i32 = arith.constant 0 : i32
    %c0_i32_0 = arith.constant 0 : i32
    return %1, %c0_i32 : i32, i32
  }
  func.func @transform_2(%arg0: i32, %arg1: i32) -> (i32, i32) {
    %c0_i32 = arith.constant 0 : i32
    %c0_i32_0 = arith.constant 0 : i32
    return %arg0, %c0_i32 : i32, i32
  }
}

</mosaic_0001>

<bundles_post_ra>
// kernel: tpu_custom_call.1
= control target key start
LH: loop header
LB: loop body
LE: loop exit
PB: predicated region body
PF: predicated region fallthrough
CT: control target
= control target key end

     0   :  { %7 = vsyncpa [#allocation4], 0  ;;  %s253_s0 = inlined_call_operand.hbm [shape: f32[16,128], index: 0, kind: input, shape index: {}]   ;;  %s254_s1 = inlined_call_operand.hbm [shape: f32[16,128], index: 1, kind: input, shape index: {}]   ;;  %s255_s2 = inlined_call_operand.hbm [shape: f32[1,1], index: 2, kind: output, shape index: {}]  }
   0x1   :  { %8 = vsyncpa [#allocation7], 0 }
   0x2   :  { %9 = vsyncpa [#allocation5], 0  ;;  %s196_s9 = smov [#allocation3]   ;;  %s136_s13 = scalar_lea.hbm %s253_s0, 256 }
   0x3   :  { %s19_s10 = sshll.u32 %s196_s9, 4  ;;  %p137_p0 = scmp.ne.s32.totalorder %s253_s0, %s136_s13  ;;  %s20_s10 = int_to_ptr.vmem [resolvable:$true] %s19_s10 }
   0x4   :  { %p140_p1 = scmp.lt.u32.totalorder %s136_s13, %s253_s0 }
   0x6   :  { %p142_p2 = pnand %p140_p1, %p137_p0 }
   0x8   :  { %145 = shalt.err (!%p142_p2)
}
   0x9   :  { %s146_s18 = scalar_lea.vmem %s20_s10, 256  ;;  %p151_p4 = scmp.lt.s32.totalorder %s20_s10, %s20_s10 }
   0xa   :  { %p147_p3 = scmp.ne.s32.totalorder %s20_s10, %s146_s18  ;;  %p152_p5 = scmp.lt.s32.totalorder %s146_s18, %s146_s18 }
   0xc   :  { %p153_p6 = por %p152_p5, %p151_p4 }
   0xe   :  { %p154_p7 = pnand %p153_p6, %p147_p3 }
  0x10   :  { %157 = shalt.err (!%p154_p7)
}
  0x11   :  { %s197_s19 = smov 128   ;;  %s198_s20 = smov 8  }
  0x12   :  { %25 = dma.hbm_to_vmem [thread:$0]  %s253_s0, 256, %s20_s10, [#allocation4], %s197_s19, %s197_s19, %s198_s20  }
  0x13   :  { %s199_s23 = smov [#allocation6]   ;;  %s158_s27 = scalar_lea.hbm %s254_s1, 256 }
  0x14   :  { %s35_s24 = sshll.u32 %s199_s23, 4  ;;  %p159_p8 = scmp.ne.s32.totalorder %s254_s1, %s158_s27  ;;  %s36_s24 = int_to_ptr.vmem [resolvable:$true] %s35_s24 }
  0x15   :  { %p162_p9 = scmp.lt.u32.totalorder %s158_s27, %s254_s1 }
  0x17   :  { %p164_p10 = pnand %p162_p9, %p159_p8 }
  0x19   :  { %167 = shalt.err (!%p164_p10)
}
  0x1a   :  { %s168_s4 = scalar_lea.vmem %s36_s24, 256  ;;  %p173_p12 = scmp.lt.s32.totalorder %s36_s24, %s36_s24 }
  0x1b   :  { %p169_p11 = scmp.ne.s32.totalorder %s36_s24, %s168_s4  ;;  %p174_p13 = scmp.lt.s32.totalorder %s168_s4, %s168_s4 }
  0x1d   :  { %p175_p0 = por %p174_p13, %p173_p12 }
  0x1f   :  { %p176_p1 = pnand %p175_p0, %p169_p11 }
  0x21   :  { %179 = shalt.err (!%p176_p1)
}
  0x22   :  { %41 = dma.hbm_to_vmem [thread:$0]  %s254_s1, 256, %s36_s24, [#allocation7], %s197_s19, %s197_s19, %s198_s20  }
  0x23   :  { %190 = dma.done.wait [#allocation4], 256  }
  0x24   :  { %191 = vsyncadd [#allocation4], 4294967040 }
  0x25   :  { %192 = dma.done.wait [#allocation7], 256  }
  0x26   :  { %193 = vsyncadd [#allocation7], 4294967040  ;;  %v58_v0 = vld [vmem:[#allocation3] sm:$0xff]  ;;  %v59_v1 = vld [vmem:[#allocation3 + $0x8] sm:$0xff]  ;;  %v200_v11 = vmov 1.0   ;;  %s180_s8 = scalar_lea.hbm %s255_s2, 16 }
  0x27   :  { %v60_v2 = vld [vmem:[#allocation6] sm:$0xff]  ;;  %v61_v3 = vld [vmem:[#allocation6 + $0x8] sm:$0xff]  ;;  %p181_p2 = scmp.ne.s32.totalorder %s255_s2, %s180_s8  ;;  %p184_p3 = scmp.lt.u32.totalorder %s180_s8, %s255_s2 }
  0x28   :  { %v62_v4 = vsub.f32 %v58_v0, %v60_v2  ;;  %v126_v5 = vadd.f32 -0.5, %v60_v2  ;;  %v63_v6 = vsub.f32 %v59_v1, %v61_v3  ;;  %v127_v7 = vadd.f32 -0.5, %v61_v3 }
  0x29   :  { %vm72_vm0 = vcmp.gt.f32.partialorder %v60_v2, 0.9  ;;  %vm73_vm1 = vcmp.gt.f32.partialorder %v61_v3, 0.9  ;;  %vm70_vm2 = vcmp.lt.f32.partialorder %v60_v2, 0.3  ;;  %p186_p4 = pnand %p184_p3, %p181_p2 }
  0x2a   :  { %v68_v8 = vmul.f32 %v126_v5, %v126_v5  ;;  %v69_v9 = vmul.f32 %v127_v7, %v127_v7  ;;  %v64_v10 = vand.u32 2147483647, %v62_v4  ;;  %v74_v12 = vsel %vm72_vm0, 2.0, %v200_v11 }
  0x2b   :  { %v65_v14 = vand.u32 2147483647, %v63_v6  ;;  %vm71_vm3 = vcmp.lt.f32.partialorder %v61_v3, 0.3  ;;  %v75_v15 = vsel %vm73_vm1, 2.0, %v200_v11  ;;  %v76_v18 = vsel %vm70_vm2, 4.0, %v74_v12 }
  0x2c   :  { %v78_v13 = vmul.f32 3.0, %v68_v8  ;;  %v79_v16 = vmul.f32 3.0, %v69_v9  ;;  %v77_v20 = vsel %vm71_vm3, 4.0, %v75_v15 }
  0x2e   :  { %v80_v17 = vadd.f32 1.0, %v78_v13  ;;  %v81_v19 = vadd.f32 1.0, %v79_v16 }
  0x30   :  { %v82_v21 = vmul.f32 %v80_v17, %v64_v10  ;;  %v83_v22 = vmul.f32 %v81_v19, %v65_v14 }
  0x32   :  { %v84_v23 = vmul.f32 %v82_v21, %v76_v18  ;;  %v85_v24 = vmul.f32 %v83_v22, %v77_v20 }
  0x34   :  { %v99_v25 = vadd.f32 %v85_v24, %v84_v23 }
  0x36   :  { %100 = vadd.xlane.f32.xlu0 %v99_v25 }
  0xc3   :  { %v101_v26 = vpop.xlane.xlu0 %100 }
  0xc4   :  { %v102_v27 = vrot.slane %v101_v26, 4 }
  0xc6   :  { %v103_v28 = vadd.f32 %v102_v27, %v101_v26 }
  0xc8   :  { %v104_v29 = vrot.slane %v103_v28, 2 }
  0xca   :  { %v105_v30 = vadd.f32 %v104_v29, %v103_v28 }
  0xcc   :  { %v106_v31 = vrot.slane %v105_v30, 1 }
  0xce   :  { %v107_v32 = vadd.f32 %v106_v31, %v105_v30 }
  0xd0   :  { %128 = vpush %v107_v32 }
 0x101   :  { %s129_s1 = spop %128 }
 0x102   :  { %110 = sst [smem:[#allocation8]] %s129_s1 }
 0x103   :  { %189 = shalt.err (!%p186_p4)
}
 0x104   :  { %s201_s13 = smov [#allocation8]  }
 0x105   :  { %118 = dma.smem_to_hbm %s201_s13, 16, %s255_s2, [#allocation5]  }
 0x106   :  { %194 = dma.done.wait [#allocation5], 16  }
 0x107   :  { %195 = vsyncadd [#allocation5], 4294967280 }
 0x108   :  { %122 = sfence }
 0x109   :  { %123 = vsyncpa [#allocation4], 1 }
 0x10a   :  { %124 = vsyncpa [#allocation7], 1 }
 0x10b   :  { %125 = vsyncpa [#allocation5], 1 }

</bundles_post_ra>
